<compile_context>
chip_gen: v7x
topology: tpu7x:2x2x1
jax: 0.10.0
libtpu: 0.0.40
codegen_flags: <defaults>
</compile_context>

<pallas_src>
import functools

import jax
import jax.numpy as jnp
from jax import lax
from jax.experimental import pallas as pl
from jax.experimental.pallas import tpu as pltpu


def _vmem_capacity_bytes():
    """Physical VMEM per TensorCore, with a conservative fallback (v7x = 64 MiB)."""
    try:
        cap = getattr(pltpu.get_tpu_info(), "vmem_capacity_bytes", None)
        if cap:
            return int(cap)
    except Exception:
        pass
    return 64 * 1024 * 1024


# ----------------------------------------------------------------------------
# Kernels
# ----------------------------------------------------------------------------
def _fused_kernel(x_ref, w_ref, b_ref, o_ref):
    """Single-pass fused channel attention on a (Nb, HW, C) slab.

    x_ref : (Nb, HW, C)  native dtype (read once)
    w_ref : (C, C)       f32 folded fc1 @ fc2 weight
    b_ref : (1, C)       f32 folded bias
    o_ref : (Nb, HW, C)  native dtype (written once)
    """
    xf = x_ref[...].astype(jnp.float32)
    inv_hw = 1.0 / xf.shape[1]                                    # static float
    pooled = jnp.sum(xf, axis=1) * inv_hw + jnp.max(xf, axis=1)   # (Nb, C) avg + max
    z = jnp.dot(pooled, w_ref[...],
                preferred_element_type=jnp.float32) + b_ref[...]  # (Nb, C)
    scale = 1.0 / (1.0 + jnp.exp(-z))                             # sigmoid
    o_ref[...] = (xf * scale[:, None, :]).astype(o_ref.dtype)


def _pool_kernel(x_ref, sum_ref, max_ref, *, hw, thw):
    """Two-pass path, pass 1: accumulate spatial sum & max per batch row.

    x_ref   : (1, THW, C) native dtype tile
    sum_ref : (1, 1, C)   f32 running sum  (output block revisited across t)
    max_ref : (1, 1, C)   f32 running max
    """
    t = pl.program_id(1)
    xf = x_ref[0].astype(jnp.float32)                             # (THW, C)
    if hw % thw:
        # Tail tile: rows past HW hold undefined data -> mask them out.
        row = lax.broadcasted_iota(jnp.int32, xf.shape, 0)
        valid = (t * thw + row) < hw
        xs = jnp.where(valid, xf, 0.0)
        xm = jnp.where(valid, xf, -jnp.inf)
    else:
        xs, xm = xf, xf

    @pl.when(t == 0)
    def _():
        sum_ref[...] = jnp.zeros_like(sum_ref)
        max_ref[...] = jnp.full_like(max_ref, -jnp.inf)

    sum_ref[0] = sum_ref[0] + jnp.sum(xs, axis=0, keepdims=True)
    max_ref[0] = jnp.maximum(max_ref[0], jnp.max(xm, axis=0, keepdims=True))


def _rescale_kernel(x_ref, s_ref, o_ref):
    """Two-pass path, pass 2: out = x * per-channel scale (streaming)."""
    xf = x_ref[...].astype(jnp.float32)                           # (1, THW, C)
    o_ref[...] = (xf * s_ref[...]).astype(o_ref.dtype)


# ----------------------------------------------------------------------------
# pallas_call wrappers
# ----------------------------------------------------------------------------
def _single_pass_call(x, w_fold, b_fold, vmem_limit, budget, bytes_per_batch):
    n, hw, c = x.shape
    nb = max(1, min(n, budget // bytes_per_batch))
    if n >= 2:
        nb = min(nb, (n + 1) // 2)   # keep >=2 grid steps so both v7x TCs get work
    while n % nb:                    # keep blocks whole (no reliance on OOB padding)
        nb -= 1
    return pl.pallas_call(
        _fused_kernel,
        out_shape=jax.ShapeDtypeStruct((n, hw, c), x.dtype),
        grid=(n // nb,),
        in_specs=[
            pl.BlockSpec((nb, hw, c), lambda i: (i, 0, 0)),
            pl.BlockSpec((c, c), lambda i: (0, 0)),
            pl.BlockSpec((1, c), lambda i: (0, 0)),
        ],
        out_specs=pl.BlockSpec((nb, hw, c), lambda i: (i, 0, 0)),
        # NOTE: x could be aliased to the output (pure in-place channel rescale)
        # via input_output_aliases={0: 0} when the caller donates x.
        compiler_params=pltpu.CompilerParams(
            dimension_semantics=("parallel",),
            vmem_limit_bytes=vmem_limit),
    )(x, w_fold, b_fold)


def _two_pass_call(x, w_fold, b_fold, vmem_limit, budget):
    n, hw, c = x.shape
    eb = x.dtype.itemsize
    bytes_per_row = c * (4 * eb + 8)
    thw = min(hw, max(8, (budget // bytes_per_row) // 8 * 8))
    nt = pl.cdiv(hw, thw)

    # Pass 1: spatial sum/max pools, HW tiled (reduction axis last, "arbitrary").
    psum, pmax = pl.pallas_call(
        functools.partial(_pool_kernel, hw=hw, thw=thw),
        out_shape=(jax.ShapeDtypeStruct((n, 1, c), jnp.float32),
                   jax.ShapeDtypeStruct((n, 1, c), jnp.float32)),
        grid=(n, nt),
        in_specs=[pl.BlockSpec((1, thw, c), lambda i, t: (i, t, 0))],
        out_specs=(pl.BlockSpec((1, 1, c), lambda i, t: (i, 0, 0)),
                   pl.BlockSpec((1, 1, c), lambda i, t: (i, 0, 0))),
        compiler_params=pltpu.CompilerParams(
            dimension_semantics=("parallel", "arbitrary"),
            vmem_limit_bytes=vmem_limit),
    )(x)

    # Tiny (N, C) folded MLP + sigmoid: negligible, done as a plain XLA op.
    scale = jax.nn.sigmoid(
        (psum[:, 0, :] * (1.0 / hw) + pmax[:, 0, :]) @ w_fold + b_fold)
    scale = scale[:, None, :].astype(jnp.float32)                 # (N, 1, C)

    # Pass 2: streaming per-channel rescale, fully parallel grid.
    return pl.pallas_call(
        _rescale_kernel,
        out_shape=jax.ShapeDtypeStruct((n, hw, c), x.dtype),
        grid=(n, nt),
        in_specs=[pl.BlockSpec((1, thw, c), lambda i, t: (i, t, 0)),
                  pl.BlockSpec((1, 1, c), lambda i, t: (i, 0, 0))],
        out_specs=pl.BlockSpec((1, thw, c), lambda i, t: (i, t, 0)),
        compiler_params=pltpu.CompilerParams(
            dimension_semantics=("parallel", "parallel"),
            vmem_limit_bytes=vmem_limit),
    )(x, scale)


def channel_attention_forward(x, fc1_w, fc1_b, fc2_w, fc2_b,
                              *, force_two_pass=False, block_budget_bytes=None):
    """CBAM-style channel attention, NHWC layout.

    x     : (N, H, W, C), any float dtype (streamed in native dtype)
    fc1_w : (C//ratio, C)  PyTorch nn.Linear weight (out, in);  fc1_b: (C//ratio,)
    fc2_w : (C, C//ratio);                                      fc2_b: (C,)
    """
    n, h, w, c = x.shape
    hw = h * w
    xr = x.reshape(n, hw, c)        # contiguous dim merge -> free, no copy / cast

    f32 = jnp.float32
    w1 = fc1_w.astype(f32).T                                      # (C, Cr)
    w2 = fc2_w.astype(f32).T                                      # (Cr, C)
    # No nonlinearity between fc1 and fc2 in the module -> fold the affine MLP:
    #   mlp(avg) + mlp(max) == (avg + max) @ (w1 @ w2) + 2*(b1 @ w2 + b2)
    w_fold = w1 @ w2                                              # (C, C)
    b_fold = (2.0 * (fc1_b.astype(f32) @ w2 + fc2_b.astype(f32))).reshape(1, c)

    cap = _vmem_capacity_bytes()
    vmem_limit = (3 * cap) // 4          # above the 16/32 MiB scoped defaults
    budget = (block_budget_bytes if block_budget_bytes is not None
              else vmem_limit // 2)

    eb = xr.dtype.itemsize
    # Per batch row per step: double-buffered in + out blocks + f32 body temps.
    bytes_per_batch = hw * c * (4 * eb + 8)

    if not force_two_pass and bytes_per_batch <= budget:
        out = _single_pass_call(xr, w_fold, b_fold, vmem_limit, budget,
                                bytes_per_batch)
    else:
        out = _two_pass_call(xr, w_fold, b_fold, vmem_limit, budget)
    return out.reshape(n, h, w, c)


# ----------------------------------------------------------------------------
# Pure-JAX reference (unfolded two-branch MLP, matches the module's intent).
# ----------------------------------------------------------------------------
def reference_forward(x, fc1_w, fc1_b, fc2_w, fc2_b):
    xf = x.astype(jnp.float32)
    avg = xf.mean(axis=(1, 2))                                    # (N, C)
    mx = xf.max(axis=(1, 2))                                      # (N, C)

    def mlp(v):
        return (v @ fc1_w.astype(jnp.float32).T + fc1_b) \
            @ fc2_w.astype(jnp.float32).T + fc2_b

    s = jax.nn.sigmoid(mlp(avg) + mlp(mx))                        # (N, C)
    return xf * s[:, None, None, :]


if __name__ == "__main__":
    key = jax.random.PRNGKey(0)
    k0, k1, k2, k3, k4, k5 = jax.random.split(key, 6)

    # Shapes consistent with the module: in_channels=96, ratio=8 -> hidden=12.
    N, H, W, C = 2, 16, 16, 96
    CR = C // 8

    x = jax.random.normal(k0, (N, H, W, C), jnp.float32)
    fc1_w = jax.random.normal(k1, (CR, C), jnp.float32) * (1.0 / jnp.sqrt(C))
    fc1_b = jax.random.normal(k2, (CR,), jnp.float32)             # nn.init.normal_
    fc2_w = jax.random.normal(k3, (C, CR), jnp.float32) * (1.0 / jnp.sqrt(CR))
    fc2_b = jax.random.normal(k4, (C,), jnp.float32)              # nn.init.normal_

    def check(got, want, tol, name):
        got = jax.block_until_ready(got)
        assert got.shape == want.shape, (name, got.shape, want.shape)
        gf = got.astype(jnp.float32)
        diff = float(jnp.max(jnp.abs(gf - want)))
        assert jnp.allclose(gf, want, rtol=tol, atol=tol), (
            "%s: max abs diff = %g" % (name, diff))

    ref = jax.block_until_ready(reference_forward(x, fc1_w, fc1_b, fc2_w, fc2_b))

    # 1) Single-pass fused path (f32, whole image per batch row).
    out = channel_attention_forward(x, fc1_w, fc1_b, fc2_w, fc2_b)
    check(out, ref, 1e-2, "single_pass_f32")

    # 2) Single-pass with several batch elements blocked per grid step.
    x4 = jax.random.normal(k5, (4, H, W, C), jnp.float32)
    ref4 = jax.block_until_ready(reference_forward(x4, fc1_w, fc1_b, fc2_w, fc2_b))
    out4 = channel_attention_forward(x4, fc1_w, fc1_b, fc2_w, fc2_b)
    check(out4, ref4, 1e-2, "single_pass_batched_f32")

    # 3) Two-pass (pool + rescale) path with a tiny forced block budget so the
    #    HW tiling + tail-tile masking used for large images / v7x is exercised.
    out_tp = channel_attention_forward(x, fc1_w, fc1_b, fc2_w, fc2_b,
                                       force_two_pass=True,
                                       block_budget_bytes=64 * 1024)
    check(out_tp, ref, 1e-2, "two_pass_f32")

    # 4) Native-dtype streaming (bf16 in HBM, f32 accumulation in-kernel).
    x_bf16 = x.astype(jnp.bfloat16)
    ref_bf16 = jax.block_until_ready(
        reference_forward(x_bf16, fc1_w, fc1_b, fc2_w, fc2_b))
    out_bf16 = channel_attention_forward(x_bf16, fc1_w, fc1_b, fc2_w, fc2_b)
    check(out_bf16, ref_bf16, 5e-2, "single_pass_bf16")

    print("KERNEL_OK")
</pallas_src>

<mosaic_0001>
module attributes {stable_mosaic.version = 11 : i64} {
  func.func @_fused_kernel(%arg0: i32, %arg1: memref<1x256x96xf32, #tpu.memory_space<vmem>>, %arg2: memref<96x96xf32, #tpu.memory_space<vmem>>, %arg3: memref<1x96xf32, #tpu.memory_space<vmem>>, %arg4: memref<1x256x96xf32, #tpu.memory_space<vmem>>) attributes {dimension_semantics = [#tpu.dimension_semantics<parallel>], iteration_bounds = array<i64: 2>, scalar_prefetch = 0 : i64, scratch_operands = 0 : i64, tpu.core_type = #tpu.core_type<tc>, window_params = [{transform_indices = @transform_0, window_bounds = array<i64: 1, 256, 96>}, {pipeline_mode = #tpu.pipeline_mode<synchronous>, transform_indices = @transform_1, window_bounds = array<i64: 96, 96>}, {pipeline_mode = #tpu.pipeline_mode<synchronous>, transform_indices = @transform_2, window_bounds = array<i64: 1, 96>}, {transform_indices = @transform_3, window_bounds = array<i64: 1, 256, 96>}]} {
    %c0 = arith.constant 0 : index
    %c0_0 = arith.constant 0 : index
    %c0_1 = arith.constant 0 : index
    %0 = vector.load %arg1[%c0, %c0_0, %c0_1] : memref<1x256x96xf32, #tpu.memory_space<vmem>>, vector<1x256x96xf32>
    %cst = arith.constant dense<0.000000e+00> : vector<1x96xf32>
    %1 = vector.multi_reduction <add>, %0, %cst [1] : vector<1x256x96xf32> to vector<1x96xf32>
    %cst_2 = arith.constant 3.906250e-03 : f32
    %2 = vector.broadcast %cst_2 : f32 to vector<1x96xf32>
    %3 = arith.mulf %1, %2 : vector<1x96xf32>
    %cst_3 = arith.constant dense<0xFF800000> : vector<1x96xf32>
    %4 = vector.multi_reduction <maximumf>, %0, %cst_3 [1] : vector<1x256x96xf32> to vector<1x96xf32>
    %5 = arith.addf %3, %4 : vector<1x96xf32>
    %c0_4 = arith.constant 0 : index
    %c0_5 = arith.constant 0 : index
    %6 = vector.load %arg2[%c0_4, %c0_5] : memref<96x96xf32, #tpu.memory_space<vmem>>, vector<96x96xf32>
    %cst_6 = arith.constant dense<0.000000e+00> : vector<1x96xf32>
    %7 = tpu.matmul %5, %6, %cst_6 {dimension_numbers = #tpu.dot_dimension_numbers<[1], [0], [0], [1], [0, 0, 1, 1], [], []>} : vector<1x96xf32>, vector<96x96xf32>, vector<1x96xf32> -> vector<1x96xf32>
    %c0_7 = arith.constant 0 : index
    %c0_8 = arith.constant 0 : index
    %8 = vector.load %arg3[%c0_7, %c0_8] : memref<1x96xf32, #tpu.memory_space<vmem>>, vector<1x96xf32>
    %9 = arith.addf %7, %8 : vector<1x96xf32>
    %cst_9 = arith.constant 0.000000e+00 : f32
    %10 = vector.broadcast %cst_9 : f32 to vector<1x96xf32>
    %11 = arith.subf %10, %9 : vector<1x96xf32>
    %12 = math.exp %11 : vector<1x96xf32>
    %cst_10 = arith.constant 1.000000e+00 : f32
    %13 = vector.broadcast %cst_10 : f32 to vector<1x96xf32>
    %14 = arith.addf %13, %12 : vector<1x96xf32>
    %cst_11 = arith.constant 1.000000e+00 : f32
    %15 = vector.broadcast %cst_11 : f32 to vector<1x96xf32>
    %16 = arith.divf %15, %14 : vector<1x96xf32>
    %17 = vector.shape_cast %16 : vector<1x96xf32> to vector<1x1x96xf32>
    %18 = vector.broadcast %17 : vector<1x1x96xf32> to vector<1x256x96xf32>
    %19 = arith.mulf %0, %18 : vector<1x256x96xf32>
    %c0_12 = arith.constant 0 : index
    %c0_13 = arith.constant 0 : index
    %c0_14 = arith.constant 0 : index
    %20 = vector.load %arg4[%c0_12, %c0_13, %c0_14] : memref<1x256x96xf32, #tpu.memory_space<vmem>>, vector<1x256x96xf32>
    tpu.vector_store %arg4[%c0_12, %c0_13, %c0_14], %19 {strides = array<i32>} : memref<1x256x96xf32, #tpu.memory_space<vmem>>, vector<1x256x96xf32>,
    return
  }
  func.func @transform_0(%arg0: i32) -> (i32, i32, i32) {
    %c0_i32 = arith.constant 0 : i32
    %c0_i32_0 = arith.constant 0 : i32
    %c0_i32_1 = arith.constant 0 : i32
    return %arg0, %c0_i32, %c0_i32_0 : i32, i32, i32
  }
  func.func @transform_1(%arg0: i32) -> (i32, i32) {
    %c0_i32 = arith.constant 0 : i32
    %c0_i32_0 = arith.constant 0 : i32
    %c0_i32_1 = arith.constant 0 : i32
    return %c0_i32, %c0_i32_0 : i32, i32
  }
  func.func @transform_2(%arg0: i32) -> (i32, i32) {
    %c0_i32 = arith.constant 0 : i32
    %c0_i32_0 = arith.constant 0 : i32
    %c0_i32_1 = arith.constant 0 : i32
    return %c0_i32, %c0_i32_0 : i32, i32
  }
  func.func @transform_3(%arg0: i32) -> (i32, i32, i32) {
    %c0_i32 = arith.constant 0 : i32
    %c0_i32_0 = arith.constant 0 : i32
    %c0_i32_1 = arith.constant 0 : i32
    return %arg0, %c0_i32, %c0_i32_0 : i32, i32, i32
  }
}

</mosaic_0001>

<bundles_post_ra>
// kernel: tpu_custom_call.1
= control target key start
LH: loop header
LB: loop body
LE: loop exit
PB: predicated region body
PF: predicated region fallthrough
CT: control target
= control target key end

     0   :  { %s677_s12 = smov 0   ;;  %s1065_s0 = inlined_call_operand.vmem [shape: f32[2,256,96], index: 0, kind: input, shape index: {}]   ;;  %s1066_s1 = inlined_call_operand.vmem [shape: f32[96,96], index: 1, kind: input, shape index: {}]   ;;  %s1067_s2 = inlined_call_operand.vmem [shape: f32[1,96], index: 2, kind: input, shape index: {}]   ;;  %s1068_s3 = inlined_call_operand.vmem [shape: f32[2,256,96], index: 3, kind: output, shape index: {}]  }
   0x1 LB: > { %s559_s13 = sadd.s32 4294967295, %s652_s12   ;;  %p563_p0 = scmp.ge.s32.totalorder %s652_s12, 1  ;;  %s652_s12 = sphi %s677_s12, %s13_s12  }
   0x2   : > { %p137_p1 = scmp.lt.s32.totalorder %s652_s12, 3 }
   0x4   : > { %p138_p2 = pnand %p563_p0, %p137_p1 }
   0x5   : > { %v344_v0 = vld [vmem:[%s1066_s1] sm:$0xff] (!%p138_p2)  ;;  %v345_v1 = vld [vmem:[%s1066_s1 + $0x8] sm:$0xff] (!%p138_p2)  ;;  %v346_v2 = vld [vmem:[%s1066_s1 + $0x10] sm:$0xff] (!%p138_p2)  ;;  %v654_v3 = vmov (!%p138_p2), 0.0|0.0   ;;  %vm655_vm0 = vmmov (!%p138_p2), 0   ;;  %v656_v6 = vmov (!%p138_p2), 0.0  }
   0x6   : > { %141 = sbr.rel (%p138_p2) target bundleno = 359 (0x167), region = 32  ;;  %613 = vmatprep.subr.bf16.mxu0 (!%p138_p2), %v654_v3  ;;  %v614_v4 = vpack.c.bf16 (!%p138_p2), %v345_v1, %v344_v0  ;;  %v347_v5 = vld [vmem:[%s1066_s1 + $0x18] sm:$0xff] (!%p138_p2)  ;;  %610 = vmatprep.mubr.msk.f32.mxu0 (!%p138_p2), %vm655_vm0, %v656_v6  ;;  %p161_p3 = scmp.lt.s32.totalorder (!%p138_p2), %s559_s13, 1  ;;  %v348_v8 = vld [vmem:[%s1066_s1 + $0x20] sm:$0xff] (!%p138_p2)  ;;  %v349_v9 = vld [vmem:[%s1066_s1 + $0x28] sm:$0xff] (!%p138_p2)  ;;  %vm203_vm1 = vcmask (!%p138_p2), 785408  }
   0x7   : > { %v617_v7 = vpack.c.bf16 (!%p138_p2), %v347_v5, %v346_v2  ;;  %v620_v10 = vpack.c.bf16 (!%p138_p2), %v349_v9, %v348_v8  ;;  %v350_v14 = vld [vmem:[%s1066_s1 + $0x30] sm:$0xff] (!%p138_p2)  ;;  %v351_v15 = vld [vmem:[%s1066_s1 + $0x38] sm:$0xff] (!%p138_p2)  ;;  %v352_v26 = vld [vmem:[%s1066_s1 + $0x40] sm:$0xff] (!%p138_p2) }
   0x8   : > { %615 = vmatpush3.bf16.msra.mxu0 (!%p138_p2), %v614_v4  ;;  %v623_v23 = vpack.c.bf16 (!%p138_p2), %v351_v15, %v350_v14  ;;  %v353_v27 = vld [vmem:[%s1066_s1 + $0x48] sm:$0xff] (!%p138_p2)  ;;  %v354_v35 = vld [vmem:[%s1066_s1 + $0x50] sm:$0xff] (!%p138_p2)  ;;  %v355_v36 = vld [vmem:[%s1066_s1 + $0x58] sm:$0xff] (!%p138_p2) }
   0x9   : > { %616 = vmatprep.subr.bf16.mxu0 (!%p138_p2), %v654_v3  ;;  %v626_v32 = vpack.c.bf16 (!%p138_p2), %v353_v27, %v352_v26  ;;  %v629_v41 = vpack.c.bf16 (!%p138_p2), %v355_v36, %v354_v35 }
   0xc   : > { %618 = vmatpush3.bf16.msra.mxu0 (!%p138_p2), %v617_v7 }
   0xd   : > { %s1070_s13 = smov (!%p161_p3, %s559_s13), 1  ;;  %619 = vmatprep.subr.bf16.mxu0 %v654_v3 }
   0xe   : > { %s571_s26 = sshll.u32 %s1070_s13, 8 }
   0xf   : > { %s711_s29 = scalar_lea.vmem %s1065_s0, %s571_s26  ;;  %s964_s21 = scalar_lea.vmem %s1068_s3, %s571_s26 }
  0x10   : > { %v714_v11 = vld [vmem:[%s711_s29] sm:$0xff]  ;;  %v717_v12 = vld [vmem:[%s711_s29 + $0x8] sm:$0xff]  ;;  %v720_v13 = vld [vmem:[%s711_s29 + $0x10] sm:$0xff]  ;;  %621 = vmatpush3.bf16.msra.mxu0 %v620_v10 }
  0x11   : > { %v729_v16 = vld [vmem:[%s711_s29 + $0x18] sm:$0xff]  ;;  %v204_v17 = vsel %vm203_vm1, %v714_v11, 0.0  ;;  %v205_v18 = vsel %vm203_vm1, %v717_v12, 0.0  ;;  %v207_v19 = vsel %vm203_vm1, %v720_v13, 0.0  ;;  %v738_v20 = vld [vmem:[%s711_s29 + $0x20] sm:$0xff]  ;;  %v743_v24 = vld [vmem:[%s711_s29 + $0x28] sm:$0xff]  ;;  %622 = vmatprep.subr.bf16.mxu0 %v654_v3 }
  0x12   : > { %v206_v21 = vadd.f32 %v205_v18, %v204_v17  ;;  %v209_v22 = vsel %vm203_vm1, %v729_v16, 0.0  ;;  %v211_v28 = vsel %vm203_vm1, %v738_v20, 0.0  ;;  %v754_v29 = vld [vmem:[%s711_s29 + $0x30] sm:$0xff]  ;;  %v213_v31 = vsel %vm203_vm1, %v743_v24, 0.0  ;;  %v759_v33 = vld [vmem:[%s711_s29 + $0x38] sm:$0xff]  ;;  %v768_v37 = vld [vmem:[%s711_s29 + $0x40] sm:$0xff] }
  0x13   : > { %v215_v38 = vsel %vm203_vm1, %v754_v29, 0.0  ;;  %v217_v40 = vsel %vm203_vm1, %v759_v33, 0.0  ;;  %v775_v42 = vld [vmem:[%s711_s29 + $0x48] sm:$0xff]  ;;  %v219_v44 = vsel %vm203_vm1, %v768_v37, 0.0  ;;  %v274_v45 = vsel %vm203_vm1, %v714_v11, -inf  ;;  %v782_v46 = vld [vmem:[%s711_s29 + $0x50] sm:$0xff] }
  0x14   : > { %v208_v25 = vadd.f32 %v207_v19, %v206_v21  ;;  %624 = vmatpush3.bf16.msra.mxu0 %v623_v23  ;;  %v275_v47 = vsel %vm203_vm1, %v717_v12, -inf  ;;  %v276_v48 = vsel %vm203_vm1, %v720_v13, -inf  ;;  %v277_v49 = vsel %vm203_vm1, %v729_v16, -inf  ;;  %v801_v56 = vld [vmem:[%s711_s29 + $0x58] sm:$0xff]  ;;  %v806_v60 = vld [vmem:[%s711_s29 + $0x60] sm:$0xff]  ;;  %v819_v6 = vld [vmem:[%s711_s29 + $0x68] sm:$0xff] }
  0x15   : > { %625 = vmatprep.subr.bf16.mxu0 %v654_v3  ;;  %v278_v50 = vsel %vm203_vm1, %v738_v20, -inf  ;;  %v280_v52 = vsel %vm203_vm1, %v743_v24, -inf  ;;  %v282_v53 = vsel %vm203_vm1, %v754_v29, -inf  ;;  %v284_v54 = vsel %vm203_vm1, %v759_v33, -inf  ;;  %v824_v9 = vld [vmem:[%s711_s29 + $0x70] sm:$0xff]  ;;  %v827_v18 = vld [vmem:[%s711_s29 + $0x78] sm:$0xff] }
  0x16   : > { %v210_v30 = vadd.f32 %v209_v22, %v208_v25  ;;  %v221_v55 = vsel %vm203_vm1, %v775_v42, 0.0  ;;  %v223_v58 = vsel %vm203_vm1, %v782_v46, 0.0  ;;  %v279_v59 = vmax.f32 %v274_v45, %v278_v50  ;;  %v840_v27 = vld [vmem:[%s711_s29 + $0x80] sm:$0xff]  ;;  %v867_v50 = vld [vmem:[%s711_s29 + $0xa8] sm:$0xff] }
  0x17   : > { %v281_v61 = vmax.f32 %v275_v47, %v280_v52  ;;  %v283_v62 = vmax.f32 %v276_v48, %v282_v53  ;;  %v285_v63 = vmax.f32 %v277_v49, %v284_v54  ;;  %v286_v0 = vsel %vm203_vm1, %v768_v37, -inf  ;;  %v864_v49 = vld [vmem:[%s711_s29 + $0xa0] sm:$0xff] }
  0x18   : > { %v212_v34 = vadd.f32 %v211_v28, %v210_v30  ;;  %627 = vmatpush3.bf16.msra.mxu0 %v626_v32  ;;  %v288_v2 = vsel %vm203_vm1, %v775_v42, -inf  ;;  %v292_v4 = vsel %vm203_vm1, %v801_v56, -inf  ;;  %v225_v5 = vsel %vm203_vm1, %v801_v56, 0.0  ;;  %v848_v32 = vld [vmem:[%s711_s29 + $0x90] sm:$0xff] }
  0x19   : > { %628 = vmatprep.subr.bf16.mxu0 %v654_v3  ;;  %v290_v3 = vsel %vm203_vm1, %v782_v46, -inf  ;;  %v227_v8 = vsel %vm203_vm1, %v806_v60, 0.0  ;;  %v287_v10 = vmax.f32 %v279_v59, %v286_v0  ;;  %v289_v14 = vmax.f32 %v281_v61, %v288_v2  ;;  %v888_v2 = vld [vmem:[%s711_s29 + $0xc0] sm:$0xff] }
  0x1a   : > { %v214_v39 = vadd.f32 %v213_v31, %v212_v34  ;;  %v291_v15 = vmax.f32 %v283_v62, %v290_v3  ;;  %v293_v17 = vmax.f32 %v285_v63, %v292_v4  ;;  %v294_v21 = vsel %vm203_vm1, %v806_v60, -inf  ;;  %v845_v31 = vld [vmem:[%s711_s29 + $0x88] sm:$0xff] }
  0x1b   : > { %v296_v22 = vsel %vm203_vm1, %v819_v6, -inf  ;;  %v298_v23 = vsel %vm203_vm1, %v824_v9, -inf  ;;  %v229_v25 = vsel %vm203_vm1, %v819_v6, 0.0  ;;  %v300_v26 = vsel %vm203_vm1, %v827_v18, -inf  ;;  %v891_v4 = vld [vmem:[%s711_s29 + $0xc8] sm:$0xff] }
  0x1c   : > { %v216_v43 = vadd.f32 %v215_v38, %v214_v39  ;;  %630 = vmatpush3.bf16.msra.mxu0 %v629_v41  ;;  %v231_v30 = vsel %vm203_vm1, %v824_v9, 0.0  ;;  %v295_v34 = vmax.f32 %v287_v10, %v294_v21  ;;  %v297_v35 = vmax.f32 %v289_v14, %v296_v22  ;;  %v853_v39 = vld [vmem:[%s711_s29 + $0x98] sm:$0xff]  ;;  %v898_v14 = vld [vmem:[%s711_s29 + $0xd0] sm:$0xff] }
  0x1d   : > { %v299_v36 = vmax.f32 %v291_v15, %v298_v23  ;;  %v302_v38 = vsel %vm203_vm1, %v840_v27, -inf  ;;  %v301_v41 = vmax.f32 %v293_v17, %v300_v26  ;;  %v233_v45 = vsel %vm203_vm1, %v827_v18, 0.0  ;;  %v901_v15 = vld [vmem:[%s711_s29 + $0xd8] sm:$0xff] }
  0x1e   : > { %v218_v51 = vadd.f32 %v217_v40, %v216_v43  ;;  %v304_v43 = vsel %vm203_vm1, %v845_v31, -inf  ;;  %v308_v47 = vsel %vm203_vm1, %v853_v39, -inf  ;;  %v303_v52 = vmax.f32 %v295_v34, %v302_v38 }
  0x1f   : > { %v305_v53 = vmax.f32 %v297_v35, %v304_v43  ;;  %v309_v59 = vmax.f32 %v301_v41, %v308_v47  ;;  %v310_v61 = vsel %vm203_vm1, %v864_v49, -inf  ;;  %v312_v62 = vsel %vm203_vm1, %v867_v50, -inf  ;;  %v918_v35 = vld [vmem:[%s711_s29 + $0xe0] sm:$0xff]  ;;  %v923_v41 = vld [vmem:[%s711_s29 + $0xe8] sm:$0xff] }
  0x20   : > { %v220_v57 = vadd.f32 %v219_v44, %v218_v51  ;;  %v306_v44 = vsel %vm203_vm1, %v848_v32, -inf  ;;  %v235_v51 = vsel %vm203_vm1, %v840_v27, 0.0  ;;  %v237_v63 = vsel %vm203_vm1, %v845_v31, 0.0 }
  0x21   : > { %v307_v54 = vmax.f32 %v299_v36, %v306_v44  ;;  %v318_v10 = vsel %vm203_vm1, %v888_v2, -inf  ;;  %v320_v22 = vsel %vm203_vm1, %v891_v4, -inf  ;;  %v241_v23 = vsel %vm203_vm1, %v853_v39, 0.0 }
  0x22   : > { %v222_v1 = vadd.f32 %v221_v55, %v220_v57  ;;  %v872_v55 = vld [vmem:[%s711_s29 + $0xb0] sm:$0xff]  ;;  %v875_v57 = vld [vmem:[%s711_s29 + $0xb8] sm:$0xff]  ;;  %v324_v26 = vsel %vm203_vm1, %v901_v15, -inf  ;;  %v243_v36 = vsel %vm203_vm1, %v864_v49, 0.0  ;;  %v326_v47 = vsel %vm203_vm1, %v918_v35, -inf }
  0x23   : > { %v314_v0 = vsel %vm203_vm1, %v872_v55, -inf }
  0x24   : > { %v224_v7 = vadd.f32 %v223_v58, %v222_v1  ;;  %v316_v1 = vsel %vm203_vm1, %v875_v57, -inf }
  0x25   : > { %v317_v21 = vmax.f32 %v309_v59, %v316_v1  ;;  %v249_v1 = vsel %vm203_vm1, %v875_v57, 0.0 }
  0x26   : > { %v226_v19 = vadd.f32 %v225_v5, %v224_v7  ;;  %v239_v5 = vsel %vm203_vm1, %v848_v32, 0.0  ;;  %v311_v7 = vmax.f32 %v303_v52, %v310_v61 }
  0x28   : > { %v228_v28 = vadd.f32 %v227_v8, %v226_v19  ;;  %v313_v8 = vmax.f32 %v305_v53, %v312_v62  ;;  %v315_v19 = vmax.f32 %v307_v54, %v314_v0  ;;  %v319_v38 = vmax.f32 %v311_v7, %v318_v10 }
  0x2a   : > { %v230_v40 = vadd.f32 %v229_v25, %v228_v28  ;;  %v322_v25 = vsel %vm203_vm1, %v898_v14, -inf  ;;  %v912_v28 = vld [vmem:[%s711_s29 + $0xf0] sm:$0xff]  ;;  %v327_v59 = vmax.f32 %v319_v38, %v326_v47 }
  0x2b   : > { %v323_v44 = vmax.f32 %v315_v19, %v322_v25  ;;  %v330_v52 = vsel %vm203_vm1, %v912_v28, -inf  ;;  %v257_v25 = vsel %vm203_vm1, %v901_v15, 0.0 }
  0x2c   : > { %v232_v48 = vadd.f32 %v231_v30, %v230_v40  ;;  %v915_v30 = vld [vmem:[%s711_s29 + $0xf8] sm:$0xff]  ;;  %v321_v40 = vmax.f32 %v313_v8, %v320_v22 }
  0x2d   : > { %v332_v53 = vsel %vm203_vm1, %v915_v30, -inf }
  0x2e   : > { %v234_v58 = vadd.f32 %v233_v45, %v232_v48  ;;  %v325_v45 = vmax.f32 %v317_v21, %v324_v26  ;;  %v245_v48 = vsel %vm203_vm1, %v867_v50, 0.0  ;;  %v255_v21 = vsel %vm203_vm1, %v898_v14, 0.0 }
  0x30   : > { %v236_v3 = vadd.f32 %v235_v51, %v234_v58  ;;  %v328_v51 = vsel %vm203_vm1, %v923_v41, -inf  ;;  %v247_v58 = vsel %vm203_vm1, %v872_v55, 0.0  ;;  %v333_v0 = vmax.f32 %v325_v45, %v332_v53 }
  0x31   : > { %v329_v62 = vmax.f32 %v321_v40, %v328_v51  ;;  %v261_v40 = vsel %vm203_vm1, %v923_v41, 0.0 }
  0x32   : > { %v238_v17 = vadd.f32 %v237_v63, %v236_v3  ;;  %v331_v63 = vmax.f32 %v323_v44, %v330_v52  ;;  %v263_v44 = vsel %vm203_vm1, %v912_v28, 0.0 }
  0x33   : > { %v334_v8 = vmax.f32 %v327_v59, %v329_v62 }
  0x34   : > { %v240_v34 = vadd.f32 %v239_v5, %v238_v17  ;;  %v251_v5 = vsel %vm203_vm1, %v888_v2, 0.0  ;;  %v335_v10 = vmax.f32 %v331_v63, %v333_v0  ;;  %v253_v17 = vsel %vm203_vm1, %v891_v4, 0.0 }
  0x36   : > { %v242_v43 = vadd.f32 %v241_v23, %v240_v34  ;;  %v336_v23 = vmax.f32 %v334_v8, %v335_v10  ;;  %v259_v34 = vsel %vm203_vm1, %v918_v35, 0.0  ;;  %v356_v8 = vld [vmem:[%s1067_s2] sm:$0x1] }
  0x38   : > { %v244_v54 = vadd.f32 %v243_v36, %v242_v43  ;;  %v337_v38 = vrot.slane %v336_v23, 4 }
  0x3a   : > { %v246_v61 = vadd.f32 %v245_v48, %v244_v54  ;;  %v338_v47 = vmax.f32 %v336_v23, %v337_v38  ;;  %v265_v48 = vsel %vm203_vm1, %v915_v30, 0.0 }
  0x3c   : > { %v248_v3 = vadd.f32 %v247_v58, %v246_v61  ;;  %v339_v53 = vrot.slane %v338_v47, 2 }
  0x3e   : > { %v250_v7 = vadd.f32 %v249_v1, %v248_v3  ;;  %v340_v59 = vmax.f32 %v338_v47, %v339_v53 }
  0x40   : > { %v252_v19 = vadd.f32 %v251_v5, %v250_v7  ;;  %v341_v63 = vrot.slane %v340_v59, 1 }
  0x42   : > { %v254_v22 = vadd.f32 %v253_v17, %v252_v19  ;;  %v342_v3 = vmax.f32 %v340_v59, %v341_v63 }
  0x44   : > { %v256_v26 = vadd.f32 %v255_v21, %v254_v22 }
  0x46   : > { %v258_v36 = vadd.f32 %v257_v25, %v256_v26  ;;  %v436_v26 = vlaneseq }
  0x48   : > { %v260_v43 = vadd.f32 %v259_v34, %v258_v36  ;;  %v437_v34 = vshrl.u32 %v436_v26, 7 }
  0x4a   : > { %v262_v45 = vadd.f32 %v261_v40, %v260_v43  ;;  %v438_v36 = vsub.s32 0, %v437_v34 }
  0x4c   : > { %v264_v51 = vadd.f32 %v263_v44, %v262_v45 }
  0x4e   : > { %v266_v52 = vadd.f32 %v265_v48, %v264_v51 }
  0x50   : > { %v267_v54 = vrot.slane %v266_v52, 4 }
  0x52   : > { %v268_v58 = vadd.f32 %v267_v54, %v266_v52 }
  0x54   : > { %v269_v61 = vrot.slane %v268_v58, 2 }
  0x56   : > { %v270_v62 = vadd.f32 %v269_v61, %v268_v58 }
  0x58   : > { %v271_v0 = vrot.slane %v270_v62, 1 }
  0x5a   : > { %v272_v1 = vadd.f32 %v271_v0, %v270_v62 }
  0x5c   : > { %v273_v5 = vmul.f32 0.00390625, %v272_v1 }
  0x5e   : > { %v343_v7 = vadd.f32 %v342_v3, %v273_v5 }
  0x60   : > { %611 = vmatmul.mubr.msk.f32.vlgmr.msra.gmra.mrb[0].mxu0 %vm203_vm1, %v343_v7 }
 0x133   : > { %v426_v10 = vpop.f32.mrb[0].mxu0 }
 0x134   : > { %v427_v17 = vadd.f32 %v426_v10, %v356_v8  ;;  %v612_v19 = vpop.f32.mrb[1].mxu0 }
 0x136   : > { %v430_v21 = vsub.f32 0.0, %v427_v17 }
 0x138   : > { %v431_v22 = vmul.f32 1.442695, %v430_v21 }
 0x13a   : > { %642 = vpow2.f32 %v431_v22 }
 0x144   : > { %v643_v23 = vpop.eup %642 }
 0x145   : > { %v433_v25 = vadd.f32 1.0, %v643_v23 }
 0x147   : > { %644 = vrcp.f32 %v433_v25 }
 0x151   : > { %v645_v38 = vpop.eup %644 }
 0x152   : > { %v439_v40 = vrot.slane %v645_v38, %v438_v36 }
 0x154   : > { %v440_v43 = vmul.f32 %v439_v40, %v714_v11  ;;  %v441_v44 = vmul.f32 %v439_v40, %v717_v12  ;;  %v442_v45 = vmul.f32 %v439_v40, %v720_v13  ;;  %v443_v47 = vmul.f32 %v439_v40, %v729_v16 }
 0x155   : > { %v444_v48 = vmul.f32 %v439_v40, %v738_v20  ;;  %v445_v51 = vmul.f32 %v439_v40, %v743_v24  ;;  %v446_v52 = vmul.f32 %v439_v40, %v754_v29  ;;  %v447_v53 = vmul.f32 %v439_v40, %v759_v33 }
 0x156   : > { %v448_v11 = vmul.f32 %v439_v40, %v768_v37  ;;  %v449_v12 = vmul.f32 %v439_v40, %v775_v42  ;;  %v450_v13 = vmul.f32 %v439_v40, %v782_v46  ;;  %v451_v16 = vmul.f32 %v439_v40, %v801_v56  ;;  %472 = vst.msk [vmem:[%s964_s21] sm:$0xff] %vm203_vm1, %v440_v43 }
 0x157   : > { %473 = vst.msk [vmem:[%s964_s21 + $0x8] sm:$0xff] %vm203_vm1, %v441_v44  ;;  %474 = vst.msk [vmem:[%s964_s21 + $0x10] sm:$0xff] %vm203_vm1, %v442_v45  ;;  %v452_v20 = vmul.f32 %v439_v40, %v806_v60  ;;  %v453_v24 = vmul.f32 %v439_v40, %v819_v6  ;;  %v454_v29 = vmul.f32 %v439_v40, %v824_v9 }
 0x158   : > { %475 = vst.msk [vmem:[%s964_s21 + $0x18] sm:$0xff] %vm203_vm1, %v443_v47  ;;  %v455_v33 = vmul.f32 %v439_v40, %v827_v18  ;;  %476 = vst.msk [vmem:[%s964_s21 + $0x20] sm:$0xff] %vm203_vm1, %v444_v48  ;;  %v456_v37 = vmul.f32 %v439_v40, %v840_v27  ;;  %v457_v42 = vmul.f32 %v439_v40, %v845_v31 }
 0x159   : > { %477 = vst.msk [vmem:[%s964_s21 + $0x28] sm:$0xff] %vm203_vm1, %v445_v51  ;;  %478 = vst.msk [vmem:[%s964_s21 + $0x30] sm:$0xff] %vm203_vm1, %v446_v52  ;;  %v458_v46 = vmul.f32 %v439_v40, %v848_v32  ;;  %v459_v56 = vmul.f32 %v439_v40, %v853_v39  ;;  %v460_v60 = vmul.f32 %v439_v40, %v864_v49 }
 0x15a   : > { %479 = vst.msk [vmem:[%s964_s21 + $0x38] sm:$0xff] %vm203_vm1, %v447_v53  ;;  %480 = vst.msk [vmem:[%s964_s21 + $0x40] sm:$0xff] %vm203_vm1, %v448_v11  ;;  %v461_v6 = vmul.f32 %v439_v40, %v867_v50  ;;  %v462_v9 = vmul.f32 %v439_v40, %v872_v55  ;;  %v463_v18 = vmul.f32 %v439_v40, %v875_v57 }
 0x15b   : > { %481 = vst.msk [vmem:[%s964_s21 + $0x48] sm:$0xff] %vm203_vm1, %v449_v12  ;;  %482 = vst.msk [vmem:[%s964_s21 + $0x50] sm:$0xff] %vm203_vm1, %v450_v13  ;;  %v464_v27 = vmul.f32 %v439_v40, %v888_v2  ;;  %v465_v31 = vmul.f32 %v439_v40, %v891_v4  ;;  %v466_v32 = vmul.f32 %v439_v40, %v898_v14 }
 0x15c   : > { %483 = vst.msk [vmem:[%s964_s21 + $0x58] sm:$0xff] %vm203_vm1, %v451_v16  ;;  %484 = vst.msk [vmem:[%s964_s21 + $0x60] sm:$0xff] %vm203_vm1, %v452_v20  ;;  %v467_v39 = vmul.f32 %v439_v40, %v901_v15  ;;  %v468_v49 = vmul.f32 %v439_v40, %v918_v35  ;;  %v469_v50 = vmul.f32 %v439_v40, %v923_v41 }
 0x15d   : > { %485 = vst.msk [vmem:[%s964_s21 + $0x68] sm:$0xff] %vm203_vm1, %v453_v24  ;;  %486 = vst.msk [vmem:[%s964_s21 + $0x70] sm:$0xff] %vm203_vm1, %v454_v29  ;;  %v470_v55 = vmul.f32 %v439_v40, %v912_v28  ;;  %v471_v57 = vmul.f32 %v439_v40, %v915_v30 }
 0x15e   : > { %487 = vst.msk [vmem:[%s964_s21 + $0x78] sm:$0xff] %vm203_vm1, %v455_v33  ;;  %488 = vst.msk [vmem:[%s964_s21 + $0x80] sm:$0xff] %vm203_vm1, %v456_v37 }
 0x15f   : > { %489 = vst.msk [vmem:[%s964_s21 + $0x88] sm:$0xff] %vm203_vm1, %v457_v42  ;;  %490 = vst.msk [vmem:[%s964_s21 + $0x90] sm:$0xff] %vm203_vm1, %v458_v46 }
 0x160   : > { %491 = vst.msk [vmem:[%s964_s21 + $0x98] sm:$0xff] %vm203_vm1, %v459_v56  ;;  %492 = vst.msk [vmem:[%s964_s21 + $0xa0] sm:$0xff] %vm203_vm1, %v460_v60 }
 0x161   : > { %493 = vst.msk [vmem:[%s964_s21 + $0xa8] sm:$0xff] %vm203_vm1, %v461_v6  ;;  %494 = vst.msk [vmem:[%s964_s21 + $0xb0] sm:$0xff] %vm203_vm1, %v462_v9 }
 0x162   : > { %495 = vst.msk [vmem:[%s964_s21 + $0xb8] sm:$0xff] %vm203_vm1, %v463_v18  ;;  %496 = vst.msk [vmem:[%s964_s21 + $0xc0] sm:$0xff] %vm203_vm1, %v464_v27 }
 0x163   : > { %497 = vst.msk [vmem:[%s964_s21 + $0xc8] sm:$0xff] %vm203_vm1, %v465_v31  ;;  %498 = vst.msk [vmem:[%s964_s21 + $0xd0] sm:$0xff] %vm203_vm1, %v466_v32 }
 0x164   : > { %499 = vst.msk [vmem:[%s964_s21 + $0xd8] sm:$0xff] %vm203_vm1, %v467_v39  ;;  %500 = vst.msk [vmem:[%s964_s21 + $0xe0] sm:$0xff] %vm203_vm1, %v468_v49 }
 0x165   : > { %501 = vst.msk [vmem:[%s964_s21 + $0xe8] sm:$0xff] %vm203_vm1, %v469_v50  ;;  %502 = vst.msk [vmem:[%s964_s21 + $0xf0] sm:$0xff] %vm203_vm1, %v470_v55 }
 0x166   : > { %503 = vst.msk [vmem:[%s964_s21 + $0xf8] sm:$0xff] %vm203_vm1, %v471_v57 }
 0x167 PF: > { %s13_s12 = sadd.s32 1, %s652_s12  }
 0x168   : > { %p10_p4 = scmp.ge.s32.totalorder %s13_s12, 4  }
 0x16a   :  { %12 = sbr.rel (!%p10_p4) target bundleno = 1 (0x1), region = 62 }

</bundles_post_ra>
